<compile_context>
chip_gen: v7x
topology: tpu7x:2x2x1
jax: 0.10.0
libtpu: 0.0.40
codegen_flags: <defaults>
</compile_context>

<pallas_src>
import functools

import jax
import jax.numpy as jnp
from jax.experimental import pallas as pl
from jax.experimental.pallas import tpu as pltpu


# ----------------------------- helpers --------------------------------------

def _round_down(x: int, m: int) -> int:
    return (x // m) * m


def _round_up(x: int, m: int) -> int:
    return ((x + m - 1) // m) * m


def _pos_plus1_f32(off, W: int, axis: int):
    """off: within-image flattened offset in [0, H*W). Returns (index+1) f32."""
    if W & (W - 1) == 0:  # power of two -> pure VPU shift / mask
        shift = W.bit_length() - 1
        pos = (off >> shift) if axis == 0 else (off & (W - 1))
    else:
        pos = (off // W) if axis == 0 else (off % W)
    return (pos + 1).astype(jnp.float32)


# ----------------------------- kernels --------------------------------------

def _kernel_single(x_ref, o_ref, *, W: int, axis: int, eps: float):
    # grid=(): whole flattened (R, L) array is one VMEM-resident block.
    rows, cols = x_ref.shape
    j = jax.lax.broadcasted_iota(jnp.int32, (rows, cols), 1)
    idx = _pos_plus1_f32(j, W, axis)
    o_ref[...] = (x_ref[...].astype(jnp.float32) * idx + eps).astype(o_ref.dtype)


def _kernel_rowcol(x_ref, o_ref, *, W: int, axis: int, eps: float, col_tile: int):
    # View is (B*C, H*W): the column index IS the within-image offset.
    rows, cols = x_ref.shape
    j = (jax.lax.broadcasted_iota(jnp.int32, (rows, cols), 1)
         + pl.program_id(1) * col_tile)
    idx = _pos_plus1_f32(j, W, axis)
    o_ref[...] = (x_ref[...].astype(jnp.float32) * idx + eps).astype(o_ref.dtype)


def _kernel_flat(x_ref, o_ref, *, W: int, L: int, axis: int, eps: float,
                 row_tile: int, col_tile: int, cols_full: int):
    # View is an arbitrary lane-dense re-fold of the fully flattened array:
    # recover the within-image offset from the global flat offset.
    rows, cols = x_ref.shape
    r = (jax.lax.broadcasted_iota(jnp.int32, (rows, cols), 0)
         + pl.program_id(0) * row_tile)
    c = (jax.lax.broadcasted_iota(jnp.int32, (rows, cols), 1)
         + pl.program_id(1) * col_tile)
    g = r * cols_full + c
    off = (g & (L - 1)) if (L & (L - 1) == 0) else (g % L)
    idx = _pos_plus1_f32(off, W, axis)
    o_ref[...] = (x_ref[...].astype(jnp.float32) * idx + eps).astype(o_ref.dtype)


# ----------------------------- wrapper --------------------------------------

# Read+write bytes below which the grid=() single-block path is used
# (roughly one pipelined tile's worth; above this, pipelining overlaps the
# read and write streams).
_SINGLE_BLOCK_BYTES = 512 * 1024
_TARGET_BLOCK_BYTES_CAP = 8 * 1024 * 1024   # never exceed this per block
_SPLIT_BYTES = 1 * 1024 * 1024              # force >=2 blocks above this


def _vmem_capacity_bytes() -> int:
    try:
        info = pltpu.get_tpu_info()
        cap = getattr(info, "vmem_capacity_bytes", None)
        if cap:
            return int(cap)
    except Exception:
        pass
    return 64 * 1024 * 1024  # conservative default (v7x per-TC VMEM)


def _largest_divisor_multiple_of_128(n: int, cap: int) -> int:
    """Largest d with d | n, d % 128 == 0, d <= cap. Requires n % 128 == 0."""
    m = n // 128
    best = 128
    i = 1
    while i * i <= m:
        if m % i == 0:
            for q in (i, m // i):
                d = q * 128
                if best < d <= cap:
                    best = d
        i += 1
    return best


def indexes1x_no_weight(x: jax.Array, *, axis: int = 0, eps: float = 1e-8,
                        single_block_bytes: int = _SINGLE_BLOCK_BYTES) -> jax.Array:
    """x: (B, C, H, W). Returns x * index_tensor + eps, with the index varying
    1..N along spatial axis `axis` of (H, W). Output dtype == input dtype."""
    B, C, H, W = x.shape
    if axis not in (0, 1):
        raise ValueError("axis must be 0 or 1 for a 2-D indexes_shape")
    R, L = B * C, H * W
    N = R * L
    itemsize = x.dtype.itemsize
    out_dtype = x.dtype
    total_bytes = 2 * N * itemsize  # read + write

    # ---- tiny path: a single grid=() invocation ----
    if total_bytes <= single_block_bytes:
        xf = x.reshape(R, L)
        out = pl.pallas_call(
            functools.partial(_kernel_single, W=W, axis=axis, eps=eps),
            out_shape=jax.ShapeDtypeStruct((R, L), out_dtype),
        )(xf)
        return out.reshape(B, C, H, W)

    # ---- byte-targeted, dtype-aware tile selection ----
    vmem_cap = _vmem_capacity_bytes()
    # ~8 MiB blocks on 128 MiB-VMEM chips (v5e/v6e), ~4 MiB on v7x (64 MiB).
    target_block = min(_TARGET_BLOCK_BYTES_CAP, vmem_cap // 16)
    col_cap = max(128, _round_down(target_block // (8 * itemsize), 128))

    if L % 128 == 0:
        rows, cols = R, L
        mode = "rowcol"
        col_tile = cols if cols <= col_cap else col_cap
    elif N % 128 == 0:
        # Re-fold the flat array into a lane-dense view to avoid masked stores.
        cols = _largest_divisor_multiple_of_128(N, col_cap)
        rows = N // cols
        mode = "flat"
        col_tile = cols  # by construction cols <= col_cap
    else:
        # Cannot make the lane axis 128-dense without ragged edges; keep the
        # (R, L) view with full-width column blocks (masked stores, correct).
        rows, cols = R, L
        mode = "rowcol"
        col_tile = cols

    row_cap = max(8, _round_down(target_block // (col_tile * itemsize), 8))
    row_tile = rows if rows <= row_cap else row_cap

    grid = (pl.cdiv(rows, row_tile), pl.cdiv(cols, col_tile))

    # v7x megacore: make sure there are >= 2 blocks so both TCs get work.
    if grid[0] * grid[1] == 1 and total_bytes > _SPLIT_BYTES:
        if rows >= 16:
            row_tile = _round_up(pl.cdiv(rows, 2), 8)
        elif cols >= 256 and (mode == "flat" or L % 128 == 0):
            col_tile = _round_up(pl.cdiv(cols, 2), 128)
        grid = (pl.cdiv(rows, row_tile), pl.cdiv(cols, col_tile))

    block_bytes = row_tile * col_tile * itemsize
    # 2 streams x 2 buffers x block + headroom, bounded by physical VMEM.
    vmem_limit = 4 * block_bytes + (8 << 20)
    vmem_limit = max(vmem_limit, 32 * 1024 * 1024)
    vmem_limit = int(min(vmem_limit, (vmem_cap * 3) // 4))

    xv = x.reshape(rows, cols)
    if mode == "flat":
        kernel = functools.partial(
            _kernel_flat, W=W, L=L, axis=axis, eps=eps,
            row_tile=row_tile, col_tile=col_tile, cols_full=cols)
    else:
        kernel = functools.partial(
            _kernel_rowcol, W=W, axis=axis, eps=eps, col_tile=col_tile)

    out = pl.pallas_call(
        kernel,
        out_shape=jax.ShapeDtypeStruct((rows, cols), out_dtype),
        grid_spec=pltpu.PrefetchScalarGridSpec(
            num_scalar_prefetch=0,
            grid=grid,
            in_specs=[pl.BlockSpec((row_tile, col_tile), lambda i, j: (i, j))],
            out_specs=pl.BlockSpec((row_tile, col_tile), lambda i, j: (i, j)),
        ),
        compiler_params=pltpu.CompilerParams(
            dimension_semantics=("parallel", "parallel"),
            vmem_limit_bytes=vmem_limit,
        ),
    )(xv)
    return out.reshape(B, C, H, W)


# ----------------------------- reference ------------------------------------

def indexes1x_no_weight_ref(x: jax.Array, *, axis: int = 0,
                            eps: float = 1e-8) -> jax.Array:
    """Pure-JAX reference mirroring the PyTorch module (f32 result)."""
    H, W = x.shape[-2:]
    spatial = (H, W)
    n = spatial[axis]
    idx = jnp.arange(1, n + 1, dtype=jnp.float32)
    shape = [1] * len(spatial)
    shape[axis] = n
    idx = idx.reshape(shape) * jnp.ones(spatial, dtype=jnp.float32)
    idx = idx[None, None]  # (1, 1, H, W)
    return x.astype(jnp.float32) * idx + eps


# ----------------------------- test harness ---------------------------------

if __name__ == "__main__":
    key = jax.random.PRNGKey(0)

    # Module config: in_channels=4, out_channels=4, shape=(16, 16), axis=0.
    B, C, H, W = 2, 4, 16, 16
    x = jax.random.normal(key, (B, C, H, W), dtype=jnp.float32)

    out = jax.block_until_ready(indexes1x_no_weight(x, axis=0))
    ref = indexes1x_no_weight_ref(x, axis=0)
    assert out.shape == (B, C, H, W) and out.dtype == x.dtype
    assert jnp.allclose(out.astype(jnp.float32), ref, atol=1e-6, rtol=1e-6)

    # axis=1 variant (exercises the lane-index (% W) branch).
    out1 = jax.block_until_ready(indexes1x_no_weight(x, axis=1))
    ref1 = indexes1x_no_weight_ref(x, axis=1)
    assert jnp.allclose(out1.astype(jnp.float32), ref1, atol=1e-6, rtol=1e-6)

    # bf16 input: dtype is preserved (no forced f32 writeback).
    # TODO(synk): PyTorch promotes to f32; we keep input dtype for bandwidth.
    xb = x.astype(jnp.bfloat16)
    outb = jax.block_until_ready(indexes1x_no_weight(xb, axis=0))
    assert outb.dtype == jnp.bfloat16
    refb = indexes1x_no_weight_ref(xb, axis=0)
    assert jnp.allclose(outb.astype(jnp.float32), refb, atol=5e-2, rtol=1e-2)

    # Tiled path with lane-dense columns (L % 128 == 0), block-origin iota.
    B2, C2, H2, W2 = 2, 4, 64, 256
    x2 = jax.random.normal(jax.random.PRNGKey(1), (B2, C2, H2, W2),
                           dtype=jnp.float32)
    out2 = jax.block_until_ready(
        indexes1x_no_weight(x2, axis=0, single_block_bytes=0))
    ref2 = indexes1x_no_weight_ref(x2, axis=0)
    assert jnp.allclose(out2.astype(jnp.float32), ref2, atol=1e-5, rtol=1e-5)

    # Tiled path that triggers the >=2-block split (row split for 2 TCs).
    B3, C3, H3, W3 = 4, 8, 128, 256
    x3 = jax.random.normal(jax.random.PRNGKey(2), (B3, C3, H3, W3),
                           dtype=jnp.float32)
    out3 = jax.block_until_ready(
        indexes1x_no_weight(x3, axis=1, single_block_bytes=0))
    ref3 = indexes1x_no_weight_ref(x3, axis=1)
    assert jnp.allclose(out3.astype(jnp.float32), ref3, atol=1e-5, rtol=1e-5)

    # Small spatial shape (8x8 -> H*W=64, not a multiple of 128): exercises
    # the lane-dense re-fold ("flat") path with flat-offset index recovery.
    B4, C4, H4, W4 = 4, 8, 8, 8
    x4 = jax.random.normal(jax.random.PRNGKey(3), (B4, C4, H4, W4),
                           dtype=jnp.float32)
    out4 = jax.block_until_ready(
        indexes1x_no_weight(x4, axis=0, single_block_bytes=0))
    ref4 = indexes1x_no_weight_ref(x4, axis=0)
    assert jnp.allclose(out4.astype(jnp.float32), ref4, atol=1e-6, rtol=1e-6)

    print("KERNEL_OK")
</pallas_src>

<mosaic_0001>
module attributes {stable_mosaic.version = 11 : i64} {
  func.func @_kernel_single(%arg0: memref<8x256xf32, #tpu.memory_space<vmem>>, %arg1: memref<8x256xf32, #tpu.memory_space<vmem>>) attributes {dimension_semantics = [], scalar_prefetch = 0 : i64, scratch_operands = 0 : i64, tpu.core_type = #tpu.core_type<tc>} {
    %0 = tpu.iota {dimensions = array<i32: 1>} : vector<8x256xi32>
    %c4_i32 = arith.constant 4 : i32
    %1 = vector.broadcast %c4_i32 : i32 to vector<8x256xi32>
    %2 = arith.shrsi %0, %1 : vector<8x256xi32>
    %c1_i32 = arith.constant 1 : i32
    %3 = vector.broadcast %c1_i32 : i32 to vector<8x256xi32>
    %4 = arith.addi %2, %3 : vector<8x256xi32>
    %5 = arith.sitofp %4 : vector<8x256xi32> to vector<8x256xf32>
    %c0 = arith.constant 0 : index
    %c0_0 = arith.constant 0 : index
    %6 = vector.load %arg0[%c0, %c0_0] : memref<8x256xf32, #tpu.memory_space<vmem>>, vector<8x256xf32>
    %7 = arith.mulf %6, %5 : vector<8x256xf32>
    %cst = arith.constant 9.99999993E-9 : f32
    %8 = vector.broadcast %cst : f32 to vector<8x256xf32>
    %9 = arith.addf %7, %8 : vector<8x256xf32>
    %c0_1 = arith.constant 0 : index
    %c0_2 = arith.constant 0 : index
    %10 = vector.load %arg1[%c0_1, %c0_2] : memref<8x256xf32, #tpu.memory_space<vmem>>, vector<8x256xf32>
    tpu.vector_store %arg1[%c0_1, %c0_2], %9 {strides = array<i32>} : memref<8x256xf32, #tpu.memory_space<vmem>>, vector<8x256xf32>,
    return
  }
}

</mosaic_0001>

<bundles_post_ra>
// kernel: tpu_custom_call.1
= control target key start
LH: loop header
LB: loop body
LE: loop exit
PB: predicated region body
PF: predicated region fallthrough
CT: control target
= control target key end

     0   :  { %6 = vsyncpa [#allocation3], 0  ;;  %s139_s0 = inlined_call_operand.hbm [shape: f32[8,256], index: 0, kind: input, shape index: {}]   ;;  %s140_s1 = inlined_call_operand.hbm [shape: f32[8,256], index: 1, kind: output, shape index: {}]  }
   0x1   :  { %7 = vsyncpa [#allocation4], 0  ;;  %s103_s6 = smov [#allocation2]   ;;  %s55_s10 = scalar_lea.hbm %s139_s0, 256 }
   0x2   :  { %s14_s7 = sshll.u32 %s103_s6, 4  ;;  %p56_p0 = scmp.ne.s32.totalorder %s139_s0, %s55_s10  ;;  %s15_s7 = int_to_ptr.vmem [resolvable:$true] %s14_s7 }
   0x3   :  { %p59_p1 = scmp.lt.u32.totalorder %s55_s10, %s139_s0 }
   0x5   :  { %p61_p2 = pnand %p59_p1, %p56_p0 }
   0x7   :  { %64 = shalt.err (!%p61_p2)
}
   0x8   :  { %s65_s15 = scalar_lea.vmem %s15_s7, 256  ;;  %p70_p4 = scmp.lt.s32.totalorder %s15_s7, %s15_s7 }
   0x9   :  { %p66_p3 = scmp.ne.s32.totalorder %s15_s7, %s65_s15  ;;  %p71_p5 = scmp.lt.s32.totalorder %s65_s15, %s65_s15 }
   0xb   :  { %p72_p6 = por %p71_p5, %p70_p4 }
   0xd   :  { %p73_p7 = pnand %p72_p6, %p66_p3 }
   0xf   :  { %76 = shalt.err (!%p73_p7)
}
  0x10   :  { %17 = dma.hbm_to_vmem [thread:$0]  %s139_s0, 256, %s15_s7, [#allocation3]  }
  0x11   :  { %99 = dma.done.wait [#allocation3], 256  }
  0x12   :  { %100 = vsyncadd [#allocation3], 4294967040  ;;  %v21_v0 = vlaneseq  ;;  %v30_v6 = vld [vmem:[#allocation2] sm:$0xff]  ;;  %v31_v9 = vld [vmem:[#allocation2 + $0x8] sm:$0xff]  ;;  %s104_s18 = smov [#allocation5]  }
  0x13   :  { %s44_s19 = sshll.u32 %s104_s18, 4  ;;  %s45_s19 = int_to_ptr.vmem [resolvable:$true] %s44_s19 }
  0x14   :  { %v22_v1 = vand.u32 127, %v21_v0  ;;  %s77_s0 = scalar_lea.vmem %s45_s19, 256  ;;  %p82_p9 = scmp.lt.s32.totalorder %s45_s19, %s45_s19 }
  0x15   :  { %p78_p8 = scmp.ne.s32.totalorder %s45_s19, %s77_s0  ;;  %p83_p10 = scmp.lt.s32.totalorder %s77_s0, %s77_s0 }
  0x16   :  { %v24_v2 = vshra.s32 %v22_v1, 4  ;;  %v23_v3 = vadd.s32 128, %v22_v1 }
  0x17   :  { %p84_p11 = por %p83_p10, %p82_p9 }
  0x18   :  { %v26_v4 = vadd.s32 1, %v24_v2  ;;  %v25_v5 = vshra.s32 %v23_v3, 4 }
  0x19   :  { %p85_p12 = pnand %p84_p11, %p78_p8 }
  0x1a   :  { %v28_v7 = vcvt.s32.f32 %v26_v4  ;;  %v27_v8 = vadd.s32 1, %v25_v5 }
  0x1c   :  { %v32_v10 = vmul.f32 %v30_v6, %v28_v7  ;;  %v29_v11 = vcvt.s32.f32 %v27_v8 }
  0x1e   :  { %v34_v12 = vadd.f32 1e-08, %v32_v10  ;;  %v33_v13 = vmul.f32 %v31_v9, %v29_v11 }
  0x20   :  { %36 = vst [vmem:[#allocation5] sm:$0xff] %v34_v12  ;;  %v35_v14 = vadd.f32 1e-08, %v33_v13 }
  0x22   :  { %37 = vst [vmem:[#allocation5 + $0x8] sm:$0xff] %v35_v14 }
  0x23   :  { %88 = shalt.err (!%p85_p12)
}
  0x24   :  { %s89_s22 = scalar_lea.hbm %s140_s1, 256 }
  0x25   :  { %p90_p13 = scmp.ne.s32.totalorder %s140_s1, %s89_s22  ;;  %p93_p0 = scmp.lt.u32.totalorder %s89_s22, %s140_s1 }
  0x27   :  { %p95_p1 = pnand %p93_p0, %p90_p13 }
  0x29   :  { %98 = shalt.err (!%p95_p1)
}
  0x2a   :  { %47 = dma.vmem_to_hbm [thread:$0]  %s45_s19, 256, %s140_s1, [#allocation4]  }
  0x2b   :  { %101 = dma.done.wait [#allocation4], 256  }
  0x2c   :  { %102 = vsyncadd [#allocation4], 4294967040 }
  0x2d   :  { %51 = vsyncpa [#allocation3], 1 }
  0x2e   :  { %52 = vsyncpa [#allocation4], 1 }

</bundles_post_ra>
